<compile_context>
chip_gen: v7x
topology: tpu7x:2x2x1
jax: 0.10.0
libtpu: 0.0.40
codegen_flags: <defaults>
</compile_context>

<pallas_src>
import functools

import jax
import jax.numpy as jnp
from jax.experimental import pallas as pl
from jax.experimental.pallas import tpu as pltpu

LN_EPS = 1e-5  # torch.nn.LayerNorm default

# Max rows per batch tile.  At hidden_dim ~32 (lane-padded to 128) a 2048-row f32
# activation tile is ~1 MiB, so even with double-buffered inputs + several live
# intermediates the footprint stays far under v7x's 64 MiB physical / 32 MiB scoped
# VMEM — no vmem_limit_bytes override needed.
_MAX_TILE_ROWS = 2048


def _round_up(x, m):
    return ((x + m - 1) // m) * m


def _choose_tiling(batch):
    """Fewest-steps-that-fit tiling with an even split for v7x megacore."""
    if batch <= 256:
        num_tiles = 1                       # single step: zero grid overhead (v5e/v6e)
    elif batch <= 2 * _MAX_TILE_ROWS:
        num_tiles = 2                       # even split -> both v7x TensorCores busy
    else:
        num_tiles = pl.cdiv(batch, _MAX_TILE_ROWS)
        num_tiles += num_tiles % 2          # keep even for v7x megacore
    tile_rows = _round_up(pl.cdiv(batch, num_tiles), 8)   # f32 sublane multiple
    padded_batch = num_tiles * tile_rows
    return tile_rows, num_tiles, padded_batch


def _layernorm(x, gamma, beta):
    mean = jnp.mean(x, axis=-1, keepdims=True)
    xm = x - mean                                   # computed once, reused
    var = jnp.mean(xm * xm, axis=-1, keepdims=True)
    inv = jax.lax.rsqrt(var + LN_EPS)
    return xm * (gamma * inv) + beta                # folded scale, FMA-friendly


def actor_kernel(
    es_ref,                                   # (tile, emb_dim + state_dim)
    # trunk: Linear(emb_dim, feature_dim) + LayerNorm(feature_dim) + Tanh
    tw_ref, tb_ref, tg_ref, tbb_ref,
    # policy layer 0 (split weight: feature part + state part) + LayerNorm + ReLU
    w0f_ref, w0s_ref, b0_ref, g0_ref, bb0_ref,
    # policy layer 1: Linear(hidden, hidden) + LayerNorm + ReLU
    w1_ref, b1_ref, g1_ref, bb1_ref,
    # policy heads: Linear(hidden, action_dim) for mu and for log_std
    w2mu_ref, b2mu_ref, w2ls_ref, b2ls_ref,
    # fused lane-concatenated output: [:, 0:A]=mu, [:, A:2A]=std, [:, 2A:3A]=tanh(mu)
    out_ref,
    *, emb_dim, log_std_min, log_std_max,
):
    f32 = jnp.float32
    es = es_ref[...].astype(f32)           # bf16 (or f32) storage -> f32 compute
    emb = es[:, :emb_dim]
    state = es[:, emb_dim:]

    # ---- trunk ----
    h = jnp.dot(emb, tw_ref[...].astype(f32), preferred_element_type=f32)
    h = h + tb_ref[...].astype(f32)
    h = _layernorm(h, tg_ref[...].astype(f32), tbb_ref[...].astype(f32))
    h = jnp.tanh(h)

    # ---- policy layer 0: split-weight matmul instead of concat([h, state]) @ W0 ----
    x = (jnp.dot(h, w0f_ref[...].astype(f32), preferred_element_type=f32)
         + jnp.dot(state, w0s_ref[...].astype(f32), preferred_element_type=f32)
         + b0_ref[...].astype(f32))
    x = _layernorm(x, g0_ref[...].astype(f32), bb0_ref[...].astype(f32))
    x = jnp.maximum(x, 0.0)

    # ---- policy layer 1 ----
    x = jnp.dot(x, w1_ref[...].astype(f32), preferred_element_type=f32)
    x = x + b1_ref[...].astype(f32)
    x = _layernorm(x, g1_ref[...].astype(f32), bb1_ref[...].astype(f32))
    x = jnp.maximum(x, 0.0)

    # ---- split heads (no lane-offset slicing of a fused 2*action_dim output) ----
    mu = jnp.dot(x, w2mu_ref[...].astype(f32), preferred_element_type=f32)
    mu = mu + b2mu_ref[...].astype(f32)
    ls = jnp.dot(x, w2ls_ref[...].astype(f32), preferred_element_type=f32)
    ls = ls + b2ls_ref[...].astype(f32)

    # log_std squashing with statically baked bounds
    ls = jnp.tanh(ls)
    ls = log_std_min + 0.5 * (log_std_max - log_std_min) * (ls + 1.0)
    std = jnp.exp(ls)

    # single wide lane-concatenated store (one vst stream instead of three 8-lane ones)
    out = jnp.concatenate([mu, std, jnp.tanh(mu)], axis=-1)
    out_ref[...] = out.astype(out_ref.dtype)


class SquashedNormalParams:
    """Lightweight stand-in for torch SquashedNormal: holds loc/scale, mean=tanh(loc)."""

    def __init__(self, loc, scale, mean):
        self.loc = loc
        self.scale = scale
        self.mean = mean


def orthogonal(key, shape, dtype=jnp.float32):
    """Deterministic orthogonal init (like nn.init.orthogonal_, gain=1)."""
    rows, cols = shape
    n, m = (rows, cols) if rows >= cols else (cols, rows)
    a = jax.random.normal(key, (n, m), dtype=jnp.float32)
    q, r = jnp.linalg.qr(a)
    q = q * jnp.sign(jnp.diag(r))
    if rows < cols:
        q = q.T
    return q[:rows, :cols].astype(dtype)


def init_params(key, emb_dim, feature_dim, state_dim, action_dim, hidden_dim):
    """Module-layout params (full w0/w2, 1-D biases) — mirrors the PyTorch module."""
    ks = jax.random.split(key, 4)
    obs_dim = feature_dim + state_dim
    p = {}
    # trunk Linear (stored transposed: [in, out])
    p["tw"] = orthogonal(ks[0], (feature_dim, emb_dim)).T
    p["tb"] = jnp.zeros((feature_dim,), jnp.float32)
    p["tg"] = jnp.ones((feature_dim,), jnp.float32)
    p["tbb"] = jnp.zeros((feature_dim,), jnp.float32)
    # policy layer 0
    p["w0"] = orthogonal(ks[1], (hidden_dim, obs_dim)).T
    p["b0"] = jnp.zeros((hidden_dim,), jnp.float32)
    p["g0"] = jnp.ones((hidden_dim,), jnp.float32)
    p["bb0"] = jnp.zeros((hidden_dim,), jnp.float32)
    # policy layer 1
    p["w1"] = orthogonal(ks[2], (hidden_dim, hidden_dim)).T
    p["b1"] = jnp.zeros((hidden_dim,), jnp.float32)
    p["g1"] = jnp.ones((hidden_dim,), jnp.float32)
    p["bb1"] = jnp.zeros((hidden_dim,), jnp.float32)
    # policy head
    p["w2"] = orthogonal(ks[3], (2 * action_dim, hidden_dim)).T
    p["b2"] = jnp.zeros((2 * action_dim,), jnp.float32)
    return p


def prepare_kernel_params(p, feature_dim, action_dim, dtype=jnp.bfloat16):
    """One-time host-side repack: split w0/w2, reshape vectors to (1, dim), cast storage dtype.

    bf16 storage halves HBM traffic (the kernel is memory-bound); all in-kernel compute
    stays f32 (cast right after load), so LN statistics and matmul accumulation are f32.
    """
    row = lambda v: v.reshape(1, -1).astype(dtype)
    mat = lambda v: v.astype(dtype)
    return {
        "tw": mat(p["tw"]), "tb": row(p["tb"]), "tg": row(p["tg"]), "tbb": row(p["tbb"]),
        "w0f": mat(p["w0"][:feature_dim]), "w0s": mat(p["w0"][feature_dim:]),
        "b0": row(p["b0"]), "g0": row(p["g0"]), "bb0": row(p["bb0"]),
        "w1": mat(p["w1"]), "b1": row(p["b1"]), "g1": row(p["g1"]), "bb1": row(p["bb1"]),
        "w2mu": mat(p["w2"][:, :action_dim]), "b2mu": row(p["b2"][:action_dim]),
        "w2ls": mat(p["w2"][:, action_dim:]), "b2ls": row(p["b2"][action_dim:]),
    }


@functools.partial(jax.jit, static_argnames=("log_std_bounds",))
def diag_gaussian_actor_forward(emb, state, kparams, log_std_bounds):
    batch, emb_dim = emb.shape
    state_dim = state.shape[1]
    action_dim = kparams["w2mu"].shape[1]
    storage_dtype = kparams["tw"].dtype

    tile_rows, num_tiles, padded_batch = _choose_tiling(batch)

    # single input stream: concat(emb, state) host-side, cast to storage dtype,
    # zero-pad remainder rows so the grid covers the array exactly.
    es = jnp.concatenate([emb, state], axis=-1).astype(storage_dtype)
    if padded_batch != batch:
        es = jnp.pad(es, ((0, padded_batch - batch), (0, 0)))

    es_spec = pl.BlockSpec((tile_rows, emb_dim + state_dim), lambda i: (i, 0))

    def full_spec(arr):
        return pl.BlockSpec(arr.shape, lambda i: (0, 0))

    ordered_params = (
        kparams["tw"], kparams["tb"], kparams["tg"], kparams["tbb"],
        kparams["w0f"], kparams["w0s"], kparams["b0"], kparams["g0"], kparams["bb0"],
        kparams["w1"], kparams["b1"], kparams["g1"], kparams["bb1"],
        kparams["w2mu"], kparams["b2mu"], kparams["w2ls"], kparams["b2ls"],
    )
    in_specs = [es_spec] + [full_spec(a) for a in ordered_params]

    # TODO(synk): output could also be emitted as bf16 if downstream sampling tolerates it.
    out_shape = jax.ShapeDtypeStruct((padded_batch, 3 * action_dim), jnp.float32)
    out_spec = pl.BlockSpec((tile_rows, 3 * action_dim), lambda i: (i, 0))

    kernel = functools.partial(
        actor_kernel,
        emb_dim=emb_dim,
        log_std_min=float(log_std_bounds[0]),
        log_std_max=float(log_std_bounds[1]),
    )

    out = pl.pallas_call(
        kernel,
        out_shape=out_shape,
        grid=(num_tiles,),
        in_specs=in_specs,
        out_specs=out_spec,
        compiler_params=pltpu.CompilerParams(dimension_semantics=("parallel",)),
    )(es, *ordered_params)

    mu = out[:batch, :action_dim]
    std = out[:batch, action_dim:2 * action_dim]
    mean = out[:batch, 2 * action_dim:]
    return mu, std, mean


def reference_forward(emb, state, params, log_std_bounds, action_dim):
    """Pure-JAX reference mirroring the PyTorch forward (uses the un-split params)."""
    def ln(x, g, b):
        m = x.mean(-1, keepdims=True)
        v = ((x - m) ** 2).mean(-1, keepdims=True)
        return (x - m) / jnp.sqrt(v + LN_EPS) * g + b

    h = jnp.tanh(ln(emb @ params["tw"] + params["tb"], params["tg"], params["tbb"]))
    obs = jnp.concatenate([h, state], axis=-1)
    x = jnp.maximum(ln(obs @ params["w0"] + params["b0"], params["g0"], params["bb0"]), 0.0)
    x = jnp.maximum(ln(x @ params["w1"] + params["b1"], params["g1"], params["bb1"]), 0.0)
    out = x @ params["w2"] + params["b2"]
    mu, log_std = out[:, :action_dim], out[:, action_dim:]
    log_std = jnp.tanh(log_std)
    lo, hi = log_std_bounds
    log_std = lo + 0.5 * (hi - lo) * (log_std + 1.0)
    return mu, jnp.exp(log_std)


if __name__ == "__main__":
    # small, module-consistent shapes
    batch = 8
    emb_dim = 32
    feature_dim = 32
    state_dim = 16
    action_dim = 8
    hidden_dim = 32
    hidden_depth = 2          # fixed in the kernel (two hidden blocks + head)
    log_std_bounds = (-5.0, 2.0)

    key = jax.random.PRNGKey(0)
    k_emb, k_state, k_params, k_emb2, k_state2 = jax.random.split(key, 5)
    emb = jax.random.normal(k_emb, (batch, emb_dim), dtype=jnp.float32)
    state = jax.random.normal(k_state, (batch, state_dim), dtype=jnp.float32)
    params = init_params(k_params, emb_dim, feature_dim, state_dim, action_dim, hidden_dim)

    # ---- f32-storage path: bit-comparable to the f32 reference --------------------
    kparams_f32 = prepare_kernel_params(params, feature_dim, action_dim, dtype=jnp.float32)
    mu, std, mean = diag_gaussian_actor_forward(emb, state, kparams_f32, log_std_bounds)
    jax.block_until_ready((mu, std, mean))

    # TODO(synk): SquashedNormal's sampling / log_prob (TanhTransform machinery) stays
    # host-side; the kernel only produces the distribution parameters.
    dist = SquashedNormalParams(loc=mu, scale=std, mean=mean)

    mu_ref, std_ref = reference_forward(emb, state, params, log_std_bounds, action_dim)
    assert jnp.allclose(dist.loc, mu_ref, atol=1e-5, rtol=1e-5)
    assert jnp.allclose(dist.scale, std_ref, atol=1e-5, rtol=1e-5)
    assert jnp.allclose(dist.mean, jnp.tanh(mu_ref), atol=1e-5, rtol=1e-5)

    # ---- bf16-storage path (default for training-scale use) -----------------------
    # Compare against the f32 reference evaluated on bf16-rounded params/inputs, so the
    # check isolates kernel correctness from the deliberate storage quantization.
    kparams_bf16 = prepare_kernel_params(params, feature_dim, action_dim, dtype=jnp.bfloat16)
    mu_b, std_b, mean_b = diag_gaussian_actor_forward(emb, state, kparams_bf16, log_std_bounds)
    jax.block_until_ready((mu_b, std_b, mean_b))

    params_q = {k: v.astype(jnp.bfloat16).astype(jnp.float32) for k, v in params.items()}
    emb_q = emb.astype(jnp.bfloat16).astype(jnp.float32)
    state_q = state.astype(jnp.bfloat16).astype(jnp.float32)
    mu_qref, std_qref = reference_forward(emb_q, state_q, params_q, log_std_bounds, action_dim)
    assert jnp.allclose(mu_b, mu_qref, atol=1e-4, rtol=1e-4)
    assert jnp.allclose(std_b, std_qref, atol=1e-4, rtol=1e-4)
    assert jnp.allclose(mean_b, jnp.tanh(mu_qref), atol=1e-4, rtol=1e-4)

    # ---- multi-tile + remainder-padding path (exercises grid=(2,), parallel axis) --
    batch2 = 300   # not a multiple of 8 -> padded to 2 tiles of 152 rows
    emb2 = jax.random.normal(k_emb2, (batch2, emb_dim), dtype=jnp.float32)
    state2 = jax.random.normal(k_state2, (batch2, state_dim), dtype=jnp.float32)
    mu2, std2, mean2 = diag_gaussian_actor_forward(emb2, state2, kparams_f32, log_std_bounds)
    jax.block_until_ready((mu2, std2, mean2))
    mu2_ref, std2_ref = reference_forward(emb2, state2, params, log_std_bounds, action_dim)
    assert mu2.shape == (batch2, action_dim)
    assert jnp.allclose(mu2, mu2_ref, atol=1e-5, rtol=1e-5)
    assert jnp.allclose(std2, std2_ref, atol=1e-5, rtol=1e-5)
    assert jnp.allclose(mean2, jnp.tanh(mu2_ref), atol=1e-5, rtol=1e-5)

    print("KERNEL_OK")
</pallas_src>

<mosaic_0001>
module attributes {stable_mosaic.version = 11 : i64} {
  func.func @actor_kernel(%arg0: i32, %arg1: memref<8x48xf32, #tpu.memory_space<vmem>>, %arg2: memref<32x32xf32, #tpu.memory_space<vmem>>, %arg3: memref<1x32xf32, #tpu.memory_space<vmem>>, %arg4: memref<1x32xf32, #tpu.memory_space<vmem>>, %arg5: memref<1x32xf32, #tpu.memory_space<vmem>>, %arg6: memref<32x32xf32, #tpu.memory_space<vmem>>, %arg7: memref<16x32xf32, #tpu.memory_space<vmem>>, %arg8: memref<1x32xf32, #tpu.memory_space<vmem>>, %arg9: memref<1x32xf32, #tpu.memory_space<vmem>>, %arg10: memref<1x32xf32, #tpu.memory_space<vmem>>, %arg11: memref<32x32xf32, #tpu.memory_space<vmem>>, %arg12: memref<1x32xf32, #tpu.memory_space<vmem>>, %arg13: memref<1x32xf32, #tpu.memory_space<vmem>>, %arg14: memref<1x32xf32, #tpu.memory_space<vmem>>, %arg15: memref<32x8xf32, #tpu.memory_space<vmem>>, %arg16: memref<1x8xf32, #tpu.memory_space<vmem>>, %arg17: memref<32x8xf32, #tpu.memory_space<vmem>>, %arg18: memref<1x8xf32, #tpu.memory_space<vmem>>, %arg19: memref<8x24xf32, #tpu.memory_space<vmem>>) attributes {dimension_semantics = [#tpu.dimension_semantics<parallel>], iteration_bounds = array<i64: 1>, scalar_prefetch = 0 : i64, scratch_operands = 0 : i64, tpu.core_type = #tpu.core_type<tc>, window_params = [{transform_indices = @transform_0, window_bounds = array<i64: 8, 48>}, {pipeline_mode = #tpu.pipeline_mode<synchronous>, transform_indices = @transform_1, window_bounds = array<i64: 32, 32>}, {pipeline_mode = #tpu.pipeline_mode<synchronous>, transform_indices = @transform_2, window_bounds = array<i64: 1, 32>}, {pipeline_mode = #tpu.pipeline_mode<synchronous>, transform_indices = @transform_3, window_bounds = array<i64: 1, 32>}, {pipeline_mode = #tpu.pipeline_mode<synchronous>, transform_indices = @transform_4, window_bounds = array<i64: 1, 32>}, {pipeline_mode = #tpu.pipeline_mode<synchronous>, transform_indices = @transform_5, window_bounds = array<i64: 32, 32>}, {pipeline_mode = #tpu.pipeline_mode<synchronous>, transform_indices = @transform_6, window_bounds = array<i64: 16, 32>}, {pipeline_mode = #tpu.pipeline_mode<synchronous>, transform_indices = @transform_7, window_bounds = array<i64: 1, 32>}, {pipeline_mode = #tpu.pipeline_mode<synchronous>, transform_indices = @transform_8, window_bounds = array<i64: 1, 32>}, {pipeline_mode = #tpu.pipeline_mode<synchronous>, transform_indices = @transform_9, window_bounds = array<i64: 1, 32>}, {pipeline_mode = #tpu.pipeline_mode<synchronous>, transform_indices = @transform_10, window_bounds = array<i64: 32, 32>}, {pipeline_mode = #tpu.pipeline_mode<synchronous>, transform_indices = @transform_11, window_bounds = array<i64: 1, 32>}, {pipeline_mode = #tpu.pipeline_mode<synchronous>, transform_indices = @transform_12, window_bounds = array<i64: 1, 32>}, {pipeline_mode = #tpu.pipeline_mode<synchronous>, transform_indices = @transform_13, window_bounds = array<i64: 1, 32>}, {pipeline_mode = #tpu.pipeline_mode<synchronous>, transform_indices = @transform_14, window_bounds = array<i64: 32, 8>}, {pipeline_mode = #tpu.pipeline_mode<synchronous>, transform_indices = @transform_15, window_bounds = array<i64: 1, 8>}, {pipeline_mode = #tpu.pipeline_mode<synchronous>, transform_indices = @transform_16, window_bounds = array<i64: 32, 8>}, {pipeline_mode = #tpu.pipeline_mode<synchronous>, transform_indices = @transform_17, window_bounds = array<i64: 1, 8>}, {transform_indices = @transform_18, window_bounds = array<i64: 8, 24>}]} {
    %c0 = arith.constant 0 : index
    %c0_0 = arith.constant 0 : index
    %0 = vector.load %arg1[%c0, %c0_0] : memref<8x48xf32, #tpu.memory_space<vmem>>, vector<8x48xf32>
    %1 = vector.extract_strided_slice %0 {offsets = [0, 0], sizes = [8, 32], strides = [1, 1]} : vector<8x48xf32> to vector<8x32xf32>
    %2 = vector.extract_strided_slice %0 {offsets = [0, 32], sizes = [8, 16], strides = [1, 1]} : vector<8x48xf32> to vector<8x16xf32>
    %c0_1 = arith.constant 0 : index
    %c0_2 = arith.constant 0 : index
    %3 = vector.load %arg2[%c0_1, %c0_2] : memref<32x32xf32, #tpu.memory_space<vmem>>, vector<32x32xf32>
    %cst = arith.constant dense<0.000000e+00> : vector<8x32xf32>
    %4 = tpu.matmul %1, %3, %cst {dimension_numbers = #tpu.dot_dimension_numbers<[1], [0], [0], [1], [0, 0, 1, 1], [], []>} : vector<8x32xf32>, vector<32x32xf32>, vector<8x32xf32> -> vector<8x32xf32>
    %c0_3 = arith.constant 0 : index
    %c0_4 = arith.constant 0 : index
    %5 = vector.load %arg3[%c0_3, %c0_4] : memref<1x32xf32, #tpu.memory_space<vmem>>, vector<1x32xf32>
    %6 = vector.broadcast %5 : vector<1x32xf32> to vector<8x32xf32>
    %7 = arith.addf %4, %6 : vector<8x32xf32>
    %c0_5 = arith.constant 0 : index
    %c0_6 = arith.constant 0 : index
    %8 = vector.load %arg4[%c0_5, %c0_6] : memref<1x32xf32, #tpu.memory_space<vmem>>, vector<1x32xf32>
    %c0_7 = arith.constant 0 : index
    %c0_8 = arith.constant 0 : index
    %9 = vector.load %arg5[%c0_7, %c0_8] : memref<1x32xf32, #tpu.memory_space<vmem>>, vector<1x32xf32>
    %cst_9 = arith.constant dense<0.000000e+00> : vector<8xf32>
    %10 = vector.multi_reduction <add>, %7, %cst_9 [1] : vector<8x32xf32> to vector<8xf32>
    %11 = vector.shape_cast %10 : vector<8xf32> to vector<8x1xf32>
    %cst_10 = arith.constant 3.200000e+01 : f32
    %12 = vector.broadcast %cst_10 : f32 to vector<8x1xf32>
    %13 = arith.divf %11, %12 : vector<8x1xf32>
    %14 = vector.broadcast %13 : vector<8x1xf32> to vector<8x32xf32>
    %15 = arith.subf %7, %14 : vector<8x32xf32>
    %16 = arith.mulf %15, %15 : vector<8x32xf32>
    %cst_11 = arith.constant dense<0.000000e+00> : vector<8xf32>
    %17 = vector.multi_reduction <add>, %16, %cst_11 [1] : vector<8x32xf32> to vector<8xf32>
    %18 = vector.shape_cast %17 : vector<8xf32> to vector<8x1xf32>
    %cst_12 = arith.constant 3.200000e+01 : f32
    %19 = vector.broadcast %cst_12 : f32 to vector<8x1xf32>
    %20 = arith.divf %18, %19 : vector<8x1xf32>
    %cst_13 = arith.constant 9.99999974E-6 : f32
    %21 = vector.broadcast %cst_13 : f32 to vector<8x1xf32>
    %22 = arith.addf %20, %21 : vector<8x1xf32>
    %23 = math.rsqrt %22 : vector<8x1xf32>
    %24 = vector.broadcast %8 : vector<1x32xf32> to vector<8x32xf32>
    %25 = vector.broadcast %23 : vector<8x1xf32> to vector<8x32xf32>
    %26 = arith.mulf %24, %25 : vector<8x32xf32>
    %27 = arith.mulf %15, %26 : vector<8x32xf32>
    %28 = vector.broadcast %9 : vector<1x32xf32> to vector<8x32xf32>
    %29 = arith.addf %27, %28 : vector<8x32xf32>
    %30 = math.tanh %29 : vector<8x32xf32>
    %c0_14 = arith.constant 0 : index
    %c0_15 = arith.constant 0 : index
    %31 = vector.load %arg6[%c0_14, %c0_15] : memref<32x32xf32, #tpu.memory_space<vmem>>, vector<32x32xf32>
    %cst_16 = arith.constant dense<0.000000e+00> : vector<8x32xf32>
    %32 = tpu.matmul %30, %31, %cst_16 {dimension_numbers = #tpu.dot_dimension_numbers<[1], [0], [0], [1], [0, 0, 1, 1], [], []>} : vector<8x32xf32>, vector<32x32xf32>, vector<8x32xf32> -> vector<8x32xf32>
    %c0_17 = arith.constant 0 : index
    %c0_18 = arith.constant 0 : index
    %33 = vector.load %arg7[%c0_17, %c0_18] : memref<16x32xf32, #tpu.memory_space<vmem>>, vector<16x32xf32>
    %cst_19 = arith.constant dense<0.000000e+00> : vector<8x32xf32>
    %34 = tpu.matmul %2, %33, %cst_19 {dimension_numbers = #tpu.dot_dimension_numbers<[1], [0], [0], [1], [0, 0, 1, 1], [], []>} : vector<8x16xf32>, vector<16x32xf32>, vector<8x32xf32> -> vector<8x32xf32>
    %35 = arith.addf %32, %34 : vector<8x32xf32>
    %c0_20 = arith.constant 0 : index
    %c0_21 = arith.constant 0 : index
    %36 = vector.load %arg8[%c0_20, %c0_21] : memref<1x32xf32, #tpu.memory_space<vmem>>, vector<1x32xf32>
    %37 = vector.broadcast %36 : vector<1x32xf32> to vector<8x32xf32>
    %38 = arith.addf %35, %37 : vector<8x32xf32>
    %c0_22 = arith.constant 0 : index
    %c0_23 = arith.constant 0 : index
    %39 = vector.load %arg9[%c0_22, %c0_23] : memref<1x32xf32, #tpu.memory_space<vmem>>, vector<1x32xf32>
    %c0_24 = arith.constant 0 : index
    %c0_25 = arith.constant 0 : index
    %40 = vector.load %arg10[%c0_24, %c0_25] : memref<1x32xf32, #tpu.memory_space<vmem>>, vector<1x32xf32>
    %cst_26 = arith.constant dense<0.000000e+00> : vector<8xf32>
    %41 = vector.multi_reduction <add>, %38, %cst_26 [1] : vector<8x32xf32> to vector<8xf32>
    %42 = vector.shape_cast %41 : vector<8xf32> to vector<8x1xf32>
    %cst_27 = arith.constant 3.200000e+01 : f32
    %43 = vector.broadcast %cst_27 : f32 to vector<8x1xf32>
    %44 = arith.divf %42, %43 : vector<8x1xf32>
    %45 = vector.broadcast %44 : vector<8x1xf32> to vector<8x32xf32>
    %46 = arith.subf %38, %45 : vector<8x32xf32>
    %47 = arith.mulf %46, %46 : vector<8x32xf32>
    %cst_28 = arith.constant dense<0.000000e+00> : vector<8xf32>
    %48 = vector.multi_reduction <add>, %47, %cst_28 [1] : vector<8x32xf32> to vector<8xf32>
    %49 = vector.shape_cast %48 : vector<8xf32> to vector<8x1xf32>
    %cst_29 = arith.constant 3.200000e+01 : f32
    %50 = vector.broadcast %cst_29 : f32 to vector<8x1xf32>
    %51 = arith.divf %49, %50 : vector<8x1xf32>
    %cst_30 = arith.constant 9.99999974E-6 : f32
    %52 = vector.broadcast %cst_30 : f32 to vector<8x1xf32>
    %53 = arith.addf %51, %52 : vector<8x1xf32>
    %54 = math.rsqrt %53 : vector<8x1xf32>
    %55 = vector.broadcast %39 : vector<1x32xf32> to vector<8x32xf32>
    %56 = vector.broadcast %54 : vector<8x1xf32> to vector<8x32xf32>
    %57 = arith.mulf %55, %56 : vector<8x32xf32>
    %58 = arith.mulf %46, %57 : vector<8x32xf32>
    %59 = vector.broadcast %40 : vector<1x32xf32> to vector<8x32xf32>
    %60 = arith.addf %58, %59 : vector<8x32xf32>
    %cst_31 = arith.constant 0.000000e+00 : f32
    %61 = vector.broadcast %cst_31 : f32 to vector<8x32xf32>
    %62 = arith.maximumf %60, %61 : vector<8x32xf32>
    %c0_32 = arith.constant 0 : index
    %c0_33 = arith.constant 0 : index
    %63 = vector.load %arg11[%c0_32, %c0_33] : memref<32x32xf32, #tpu.memory_space<vmem>>, vector<32x32xf32>
    %cst_34 = arith.constant dense<0.000000e+00> : vector<8x32xf32>
    %64 = tpu.matmul %62, %63, %cst_34 {dimension_numbers = #tpu.dot_dimension_numbers<[1], [0], [0], [1], [0, 0, 1, 1], [], []>} : vector<8x32xf32>, vector<32x32xf32>, vector<8x32xf32> -> vector<8x32xf32>
    %c0_35 = arith.constant 0 : index
    %c0_36 = arith.constant 0 : index
    %65 = vector.load %arg12[%c0_35, %c0_36] : memref<1x32xf32, #tpu.memory_space<vmem>>, vector<1x32xf32>
    %66 = vector.broadcast %65 : vector<1x32xf32> to vector<8x32xf32>
    %67 = arith.addf %64, %66 : vector<8x32xf32>
    %c0_37 = arith.constant 0 : index
    %c0_38 = arith.constant 0 : index
    %68 = vector.load %arg13[%c0_37, %c0_38] : memref<1x32xf32, #tpu.memory_space<vmem>>, vector<1x32xf32>
    %c0_39 = arith.constant 0 : index
    %c0_40 = arith.constant 0 : index
    %69 = vector.load %arg14[%c0_39, %c0_40] : memref<1x32xf32, #tpu.memory_space<vmem>>, vector<1x32xf32>
    %cst_41 = arith.constant dense<0.000000e+00> : vector<8xf32>
    %70 = vector.multi_reduction <add>, %67, %cst_41 [1] : vector<8x32xf32> to vector<8xf32>
    %71 = vector.shape_cast %70 : vector<8xf32> to vector<8x1xf32>
    %cst_42 = arith.constant 3.200000e+01 : f32
    %72 = vector.broadcast %cst_42 : f32 to vector<8x1xf32>
    %73 = arith.divf %71, %72 : vector<8x1xf32>
    %74 = vector.broadcast %73 : vector<8x1xf32> to vector<8x32xf32>
    %75 = arith.subf %67, %74 : vector<8x32xf32>
    %76 = arith.mulf %75, %75 : vector<8x32xf32>
    %cst_43 = arith.constant dense<0.000000e+00> : vector<8xf32>
    %77 = vector.multi_reduction <add>, %76, %cst_43 [1] : vector<8x32xf32> to vector<8xf32>
    %78 = vector.shape_cast %77 : vector<8xf32> to vector<8x1xf32>
    %cst_44 = arith.constant 3.200000e+01 : f32
    %79 = vector.broadcast %cst_44 : f32 to vector<8x1xf32>
    %80 = arith.divf %78, %79 : vector<8x1xf32>
    %cst_45 = arith.constant 9.99999974E-6 : f32
    %81 = vector.broadcast %cst_45 : f32 to vector<8x1xf32>
    %82 = arith.addf %80, %81 : vector<8x1xf32>
    %83 = math.rsqrt %82 : vector<8x1xf32>
    %84 = vector.broadcast %68 : vector<1x32xf32> to vector<8x32xf32>
    %85 = vector.broadcast %83 : vector<8x1xf32> to vector<8x32xf32>
    %86 = arith.mulf %84, %85 : vector<8x32xf32>
    %87 = arith.mulf %75, %86 : vector<8x32xf32>
    %88 = vector.broadcast %69 : vector<1x32xf32> to vector<8x32xf32>
    %89 = arith.addf %87, %88 : vector<8x32xf32>
    %cst_46 = arith.constant 0.000000e+00 : f32
    %90 = vector.broadcast %cst_46 : f32 to vector<8x32xf32>
    %91 = arith.maximumf %89, %90 : vector<8x32xf32>
    %c0_47 = arith.constant 0 : index
    %c0_48 = arith.constant 0 : index
    %92 = vector.load %arg15[%c0_47, %c0_48] : memref<32x8xf32, #tpu.memory_space<vmem>>, vector<32x8xf32>
    %cst_49 = arith.constant dense<0.000000e+00> : vector<8x8xf32>
    %93 = tpu.matmul %91, %92, %cst_49 {dimension_numbers = #tpu.dot_dimension_numbers<[1], [0], [0], [1], [0, 0, 1, 1], [], []>} : vector<8x32xf32>, vector<32x8xf32>, vector<8x8xf32> -> vector<8x8xf32>
    %c0_50 = arith.constant 0 : index
    %c0_51 = arith.constant 0 : index
    %94 = vector.load %arg16[%c0_50, %c0_51] : memref<1x8xf32, #tpu.memory_space<vmem>>, vector<1x8xf32>
    %95 = vector.broadcast %94 : vector<1x8xf32> to vector<8x8xf32>
    %96 = arith.addf %93, %95 : vector<8x8xf32>
    %c0_52 = arith.constant 0 : index
    %c0_53 = arith.constant 0 : index
    %97 = vector.load %arg17[%c0_52, %c0_53] : memref<32x8xf32, #tpu.memory_space<vmem>>, vector<32x8xf32>
    %cst_54 = arith.constant dense<0.000000e+00> : vector<8x8xf32>
    %98 = tpu.matmul %91, %97, %cst_54 {dimension_numbers = #tpu.dot_dimension_numbers<[1], [0], [0], [1], [0, 0, 1, 1], [], []>} : vector<8x32xf32>, vector<32x8xf32>, vector<8x8xf32> -> vector<8x8xf32>
    %c0_55 = arith.constant 0 : index
    %c0_56 = arith.constant 0 : index
    %99 = vector.load %arg18[%c0_55, %c0_56] : memref<1x8xf32, #tpu.memory_space<vmem>>, vector<1x8xf32>
    %100 = vector.broadcast %99 : vector<1x8xf32> to vector<8x8xf32>
    %101 = arith.addf %98, %100 : vector<8x8xf32>
    %102 = math.tanh %101 : vector<8x8xf32>
    %cst_57 = arith.constant 1.000000e+00 : f32
    %103 = vector.broadcast %cst_57 : f32 to vector<8x8xf32>
    %104 = arith.addf %102, %103 : vector<8x8xf32>
    %cst_58 = arith.constant 3.500000e+00 : f32
    %105 = vector.broadcast %cst_58 : f32 to vector<8x8xf32>
    %106 = arith.mulf %105, %104 : vector<8x8xf32>
    %cst_59 = arith.constant -5.000000e+00 : f32
    %107 = vector.broadcast %cst_59 : f32 to vector<8x8xf32>
    %108 = arith.addf %107, %106 : vector<8x8xf32>
    %109 = math.exp %108 : vector<8x8xf32>
    %110 = math.tanh %96 : vector<8x8xf32>
    %111 = tpu.concatenate %96, %109, %110 in 1 : vector<8x8xf32>, vector<8x8xf32>, vector<8x8xf32> -> vector<8x24xf32>
    %c0_60 = arith.constant 0 : index
    %c0_61 = arith.constant 0 : index
    %112 = vector.load %arg19[%c0_60, %c0_61] : memref<8x24xf32, #tpu.memory_space<vmem>>, vector<8x24xf32>
    tpu.vector_store %arg19[%c0_60, %c0_61], %111 {strides = array<i32>} : memref<8x24xf32, #tpu.memory_space<vmem>>, vector<8x24xf32>,
    return
  }
  func.func @transform_0(%arg0: i32) -> (i32, i32) {
    %c0_i32 = arith.constant 0 : i32
    %c0_i32_0 = arith.constant 0 : i32
    return %arg0, %c0_i32 : i32, i32
  }
  func.func @transform_1(%arg0: i32) -> (i32, i32) {
    %c0_i32 = arith.constant 0 : i32
    %c0_i32_0 = arith.constant 0 : i32
    %c0_i32_1 = arith.constant 0 : i32
    return %c0_i32, %c0_i32_0 : i32, i32
  }
  func.func @transform_2(%arg0: i32) -> (i32, i32) {
    %c0_i32 = arith.constant 0 : i32
    %c0_i32_0 = arith.constant 0 : i32
    %c0_i32_1 = arith.constant 0 : i32
    return %c0_i32, %c0_i32_0 : i32, i32
  }
  func.func @transform_3(%arg0: i32) -> (i32, i32) {
    %c0_i32 = arith.constant 0 : i32
    %c0_i32_0 = arith.constant 0 : i32
    %c0_i32_1 = arith.constant 0 : i32
    return %c0_i32, %c0_i32_0 : i32, i32
  }
  func.func @transform_4(%arg0: i32) -> (i32, i32) {
    %c0_i32 = arith.constant 0 : i32
    %c0_i32_0 = arith.constant 0 : i32
    %c0_i32_1 = arith.constant 0 : i32
    return %c0_i32, %c0_i32_0 : i32, i32
  }
  func.func @transform_5(%arg0: i32) -> (i32, i32) {
    %c0_i32 = arith.constant 0 : i32
    %c0_i32_0 = arith.constant 0 : i32
    %c0_i32_1 = arith.constant 0 : i32
    return %c0_i32, %c0_i32_0 : i32, i32
  }
  func.func @transform_6(%arg0: i32) -> (i32, i32) {
    %c0_i32 = arith.constant 0 : i32
    %c0_i32_0 = arith.constant 0 : i32
    %c0_i32_1 = arith.constant 0 : i32
    return %c0_i32, %c0_i32_0 : i32, i32
  }
  func.func @transform_7(%arg0: i32) -> (i32, i32) {
    %c0_i32 = arith.constant 0 : i32
    %c0_i32_0 = arith.constant 0 : i32
    %c0_i32_1 = arith.constant 0 : i32
    return %c0_i32, %c0_i32_0 : i32, i32
  }
  func.func @transform_8(%arg0: i32) -> (i32, i32) {
    %c0_i32 = arith.constant 0 : i32
    %c0_i32_0 = arith.constant 0 : i32
    %c0_i32_1 = arith.constant 0 : i32
    return %c0_i32, %c0_i32_0 : i32, i32
  }
  func.func @transform_9(%arg0: i32) -> (i32, i32) {
    %c0_i32 = arith.constant 0 : i32
    %c0_i32_0 = arith.constant 0 : i32
    %c0_i32_1 = arith.constant 0 : i32
    return %c0_i32, %c0_i32_0 : i32, i32
  }
  func.func @transform_10(%arg0: i32) -> (i32, i32) {
    %c0_i32 = arith.constant 0 : i32
    %c0_i32_0 = arith.constant 0 : i32
    %c0_i32_1 = arith.constant 0 : i32
    return %c0_i32, %c0_i32_0 : i32, i32
  }
  func.func @transform_11(%arg0: i32) -> (i32, i32) {
    %c0_i32 = arith.constant 0 : i32
    %c0_i32_0 = arith.constant 0 : i32
    %c0_i32_1 = arith.constant 0 : i32
    return %c0_i32, %c0_i32_0 : i32, i32
  }
  func.func @transform_12(%arg0: i32) -> (i32, i32) {
    %c0_i32 = arith.constant 0 : i32
    %c0_i32_0 = arith.constant 0 : i32
    %c0_i32_1 = arith.constant 0 : i32
    return %c0_i32, %c0_i32_0 : i32, i32
  }
  func.func @transform_13(%arg0: i32) -> (i32, i32) {
    %c0_i32 = arith.constant 0 : i32
    %c0_i32_0 = arith.constant 0 : i32
    %c0_i32_1 = arith.constant 0 : i32
    return %c0_i32, %c0_i32_0 : i32, i32
  }
  func.func @transform_14(%arg0: i32) -> (i32, i32) {
    %c0_i32 = arith.constant 0 : i32
    %c0_i32_0 = arith.constant 0 : i32
    %c0_i32_1 = arith.constant 0 : i32
    return %c0_i32, %c0_i32_0 : i32, i32
  }
  func.func @transform_15(%arg0: i32) -> (i32, i32) {
    %c0_i32 = arith.constant 0 : i32
    %c0_i32_0 = arith.constant 0 : i32
    %c0_i32_1 = arith.constant 0 : i32
    return %c0_i32, %c0_i32_0 : i32, i32
  }
  func.func @transform_16(%arg0: i32) -> (i32, i32) {
    %c0_i32 = arith.constant 0 : i32
    %c0_i32_0 = arith.constant 0 : i32
    %c0_i32_1 = arith.constant 0 : i32
    return %c0_i32, %c0_i32_0 : i32, i32
  }
  func.func @transform_17(%arg0: i32) -> (i32, i32) {
    %c0_i32 = arith.constant 0 : i32
    %c0_i32_0 = arith.constant 0 : i32
    %c0_i32_1 = arith.constant 0 : i32
    return %c0_i32, %c0_i32_0 : i32, i32
  }
  func.func @transform_18(%arg0: i32) -> (i32, i32) {
    %c0_i32 = arith.constant 0 : i32
    %c0_i32_0 = arith.constant 0 : i32
    return %arg0, %c0_i32 : i32, i32
  }
}

</mosaic_0001>

<bundles_post_ra>
// kernel: diag_gaussian_actor_forward.1
= control target key start
LH: loop header
LB: loop body
LE: loop exit
PB: predicated region body
PF: predicated region fallthrough
CT: control target
= control target key end

     0   :  { %s1353_s0 = inlined_call_operand.vmem [shape: f32[8,48], index: 0, kind: input, shape index: {}]   ;;  %s1354_s1 = inlined_call_operand.vmem [shape: f32[32,32], index: 1, kind: input, shape index: {}]   ;;  %s1355_s2 = inlined_call_operand.vmem [shape: f32[1,32], index: 2, kind: input, shape index: {}]   ;;  %s1356_s3 = inlined_call_operand.vmem [shape: f32[1,32], index: 3, kind: input, shape index: {}]   ;;  %s1357_s4 = inlined_call_operand.vmem [shape: f32[1,32], index: 4, kind: input, shape index: {}]   ;;  %s1358_s5 = inlined_call_operand.vmem [shape: f32[32,32], index: 5, kind: input, shape index: {}]   ;;  %s1359_s6 = inlined_call_operand.vmem [shape: f32[16,32], index: 6, kind: input, shape index: {}]   ;;  %s1360_s7 = inlined_call_operand.hbm [shape: f32[1,32], index: 7, kind: input, shape index: {}]   ;;  %s1361_s8 = inlined_call_operand.vmem [shape: f32[1,32], index: 8, kind: input, shape index: {}]   ;;  %s1362_s9 = inlined_call_operand.hbm [shape: f32[1,32], index: 9, kind: input, shape index: {}]   ;;  %s1363_s10 = inlined_call_operand.vmem [shape: f32[32,32], index: 10, kind: input, shape index: {}]   ;;  %s1364_s11 = inlined_call_operand.hbm [shape: f32[1,32], index: 11, kind: input, shape index: {}]   ;;  %s1365_s12 = inlined_call_operand.vmem [shape: f32[1,32], index: 12, kind: input, shape index: {}]   ;;  %s1366_s13 = inlined_call_operand.hbm [shape: f32[1,32], index: 13, kind: input, shape index: {}]   ;;  %s1367_s14 = inlined_call_operand.vmem [shape: f32[32,8], index: 14, kind: input, shape index: {}]   ;;  %s1368_s15 = inlined_call_operand.hbm [shape: f32[1,8], index: 15, kind: input, shape index: {}]   ;;  %s1369_s16 = inlined_call_operand.vmem [shape: f32[32,8], index: 16, kind: input, shape index: {}]   ;;  %s1370_s17 = inlined_call_operand.hbm [shape: f32[1,8], index: 17, kind: input, shape index: {}]   ;;  %s1371_s18 = inlined_call_operand.vmem [shape: f32[8,24], index: 18, kind: output, shape index: {}]  }
   0x1   :  { %1373 = sst [smem:[#allocation16_spill]] %s1353_s0 }
   0x2   :  { %1374 = sst [smem:[#allocation17_spill]] %s1354_s1 }
   0x3   :  { %1375 = sst [smem:[#allocation18_spill]] %s1355_s2 }
   0x4   :  { %23 = vsyncpa [#allocation3], 0 }
   0x5   :  { %24 = vsyncpa [#allocation5], 0 }
   0x6   :  { %25 = vsyncpa [#allocation8], 0 }
   0x7   :  { %26 = vsyncpa [#allocation11], 0  ;;  %s1051_s27 = smov [#allocation4]   ;;  %s1052_s29 = smov [#allocation7]  }
   0x8   :  { %s59_s28 = sshll.u32 %s1051_s27, 4  ;;  %s83_s30 = sshll.u32 %s1052_s29, 4  ;;  %s60_s28 = int_to_ptr.vmem [resolvable:$true] %s59_s28  ;;  %s84_s30 = int_to_ptr.vmem [resolvable:$true] %s83_s30 }
   0x9   :  { %s911_s1 = scalar_lea.hbm %s1362_s9, 16 }
   0xa   :  { %p912_p0 = scmp.ne.s32.totalorder %s1362_s9, %s911_s1  ;;  %p915_p1 = scmp.lt.u32.totalorder %s911_s1, %s1362_s9 }
   0xc   :  { %p917_p2 = pnand %p915_p1, %p912_p0 }
   0xe   :  { %920 = shalt.err (!%p917_p2)
}
   0xf   :  { %s921_s23 = scalar_lea.vmem %s60_s28, 16  ;;  %s925_s24 = scalar_lea.vmem %s60_s28, 32 }
  0x10   :  { %p922_p3 = scmp.ne.s32.totalorder %s60_s28, %s921_s23  ;;  %p926_p4 = scmp.lt.s32.totalorder %s60_s28, %s60_s28 }
  0x11   :  { %p927_p5 = scmp.lt.s32.totalorder %s925_s24, %s921_s23 }
  0x13   :  { %p928_p6 = por %p927_p5, %p926_p4 }
  0x15   :  { %p929_p7 = pnand %p928_p6, %p922_p3 }
  0x17   :  { %932 = shalt.err (!%p929_p7)
}
  0x18   :  { %62 = dma.hbm_to_vmem [thread:$0]  %s1362_s9, 16, %s60_s28, [#allocation5]  }
  0x19   :  { %s933_s0 = scalar_lea.hbm %s1366_s13, 16 }
  0x1a   :  { %p934_p8 = scmp.ne.s32.totalorder %s1366_s13, %s933_s0  ;;  %p937_p9 = scmp.lt.u32.totalorder %s933_s0, %s1366_s13 }
  0x1c   :  { %p939_p10 = pnand %p937_p9, %p934_p8 }
  0x1e   :  { %942 = shalt.err (!%p939_p10)
}
  0x1f   :  { %s943_s22 = scalar_lea.vmem %s84_s30, 16  ;;  %s947_s2 = scalar_lea.vmem %s84_s30, 32 }
  0x20   :  { %p944_p11 = scmp.ne.s32.totalorder %s84_s30, %s943_s22  ;;  %p948_p12 = scmp.lt.s32.totalorder %s84_s30, %s84_s30 }
  0x21   :  { %p949_p13 = scmp.lt.s32.totalorder %s947_s2, %s943_s22 }
  0x23   :  { %p950_p0 = por %p949_p13, %p948_p12 }
  0x25   :  { %p951_p1 = pnand %p950_p0, %p944_p11 }
  0x27   :  { %954 = shalt.err (!%p951_p1)
}
  0x28   :  { %86 = dma.hbm_to_vmem [thread:$0]  %s1366_s13, 16, %s84_s30, [#allocation8]  }
  0x29   :  { %s1053_s23 = smov [#allocation2]   ;;  %s1054_s25 = smov [#allocation6]  }
  0x2a   :  { %s47_s24 = sshll.u32 %s1053_s23, 4  ;;  %s71_s26 = sshll.u32 %s1054_s25, 4  ;;  %s48_s24 = int_to_ptr.vmem [resolvable:$true] %s47_s24  ;;  %s72_s26 = int_to_ptr.vmem [resolvable:$true] %s71_s26 }
  0x2b   :  { %s955_s0 = scalar_lea.hbm %s1360_s7, 16 }
  0x2c   :  { %p956_p2 = scmp.ne.s32.totalorder %s1360_s7, %s955_s0  ;;  %p959_p3 = scmp.lt.u32.totalorder %s955_s0, %s1360_s7 }
  0x2e   :  { %p961_p4 = pnand %p959_p3, %p956_p2 }
  0x30   :  { %964 = shalt.err (!%p961_p4)
}
  0x31   :  { %s965_s13 = scalar_lea.vmem %s48_s24, 16  ;;  %s969_s30 = scalar_lea.vmem %s48_s24, 32 }
  0x32   :  { %p966_p5 = scmp.ne.s32.totalorder %s48_s24, %s965_s13  ;;  %p970_p6 = scmp.lt.s32.totalorder %s48_s24, %s48_s24 }
  0x33   :  { %p971_p7 = scmp.lt.s32.totalorder %s969_s30, %s965_s13 }
  0x35   :  { %p972_p8 = por %p971_p7, %p970_p6 }
  0x37   :  { %p973_p9 = pnand %p972_p8, %p966_p5 }
  0x39   :  { %976 = shalt.err (!%p973_p9)
}
  0x3a   :  { %50 = dma.hbm_to_vmem [thread:$0]  %s1360_s7, 16, %s48_s24, [#allocation3]  }
  0x3b   :  { %s977_s23 = scalar_lea.hbm %s1364_s11, 16 }
  0x3c   :  { %p978_p10 = scmp.ne.s32.totalorder %s1364_s11, %s977_s23  ;;  %p981_p11 = scmp.lt.u32.totalorder %s977_s23, %s1364_s11 }
  0x3e   :  { %p983_p12 = pnand %p981_p11, %p978_p10 }
  0x40   :  { %986 = shalt.err (!%p983_p12)
}
  0x41   :  { %s987_s19 = scalar_lea.vmem %s72_s26, 16  ;;  %s991_s1 = scalar_lea.vmem %s72_s26, 32 }
  0x42   :  { %p988_p13 = scmp.ne.s32.totalorder %s72_s26, %s987_s19  ;;  %p992_p0 = scmp.lt.s32.totalorder %s72_s26, %s72_s26 }
  0x43   :  { %p993_p1 = scmp.lt.s32.totalorder %s991_s1, %s987_s19 }
  0x45   :  { %p994_p2 = por %p993_p1, %p992_p0 }
  0x47   :  { %p995_p3 = pnand %p994_p2, %p988_p13 }
  0x49   :  { %998 = shalt.err (!%p995_p3)
}
  0x4a   :  { %74 = dma.hbm_to_vmem [thread:$0]  %s1364_s11, 16, %s72_s26, [#allocation5]  }
  0x4b   :  { %s1055_s20 = smov [#allocation9]   ;;  %s1056_s13 = smov [#allocation10]  }
  0x4c   :  { %s95_s21 = sshll.u32 %s1055_s20, 4  ;;  %s107_s30 = sshll.u32 %s1056_s13, 4  ;;  %s96_s21 = int_to_ptr.vmem [resolvable:$true] %s95_s21  ;;  %s108_s30 = int_to_ptr.vmem [resolvable:$true] %s107_s30 }
  0x4d   :  { %s999_s9 = scalar_lea.hbm %s1368_s15, 16 }
  0x4e   :  { %p1000_p4 = scmp.ne.s32.totalorder %s1368_s15, %s999_s9  ;;  %p1003_p5 = scmp.lt.u32.totalorder %s999_s9, %s1368_s15 }
  0x50   :  { %p1005_p6 = pnand %p1003_p5, %p1000_p4 }
  0x52   :  { %1008 = shalt.err (!%p1005_p6)
}
  0x53   :  { %s1009_s11 = scalar_lea.vmem %s96_s21, 16  ;;  %s1013_s26 = scalar_lea.vmem %s96_s21, 32 }
  0x54   :  { %p1010_p7 = scmp.ne.s32.totalorder %s96_s21, %s1009_s11  ;;  %p1014_p8 = scmp.lt.s32.totalorder %s96_s21, %s96_s21 }
  0x55   :  { %p1015_p9 = scmp.lt.s32.totalorder %s1013_s26, %s1009_s11 }
  0x57   :  { %p1016_p10 = por %p1015_p9, %p1014_p8 }
  0x59   :  { %p1017_p11 = pnand %p1016_p10, %p1010_p7 }
  0x5b   :  { %1020 = shalt.err (!%p1017_p11)
}
  0x5c   :  { %98 = dma.hbm_to_vmem [thread:$0]  %s1368_s15, 16, %s96_s21, [#allocation8]  }
  0x5d   :  { %s1021_s7 = scalar_lea.hbm %s1370_s17, 16 }
  0x5e   :  { %p1022_p12 = scmp.ne.s32.totalorder %s1370_s17, %s1021_s7  ;;  %p1025_p13 = scmp.lt.u32.totalorder %s1021_s7, %s1370_s17 }
  0x60   :  { %p1027_p0 = pnand %p1025_p13, %p1022_p12 }
  0x62   :  { %1030 = shalt.err (!%p1027_p0)
}
  0x63   :  { %s1031_s2 = scalar_lea.vmem %s108_s30, 16  ;;  %s1035_s9 = scalar_lea.vmem %s108_s30, 32 }
  0x64   :  { %p1032_p1 = scmp.ne.s32.totalorder %s108_s30, %s1031_s2  ;;  %p1036_p2 = scmp.lt.s32.totalorder %s108_s30, %s108_s30 }
  0x65   :  { %p1037_p3 = scmp.lt.s32.totalorder %s1035_s9, %s1031_s2 }
  0x67   :  { %p1038_p4 = por %p1037_p3, %p1036_p2 }
  0x69   :  { %p1039_p5 = pnand %p1038_p4, %p1032_p1 }
  0x6b   :  { %1042 = shalt.err (!%p1039_p5)
}
  0x6c   :  { %110 = dma.hbm_to_vmem [thread:$0]  %s1370_s17, 16, %s108_s30, [#allocation11]  }
  0x6d   :  { %1043 = dma.done.wait [#allocation3], 16  }
  0x6e   :  { %1044 = vsyncadd [#allocation3], 4294967280 }
  0x6f   :  { %1045 = dma.done.wait [#allocation5], 32  }
  0x70   :  { %1046 = vsyncadd [#allocation5], 4294967264 }
  0x71   :  { %1047 = dma.done.wait [#allocation8], 32  }
  0x72   :  { %1048 = vsyncadd [#allocation8], 4294967264 }
  0x73   :  { %1049 = dma.done.wait [#allocation11], 16  }
  0x74   :  { %1050 = vsyncadd [#allocation11], 4294967280  ;;  %v1057_v0 = vmov 0.0|0.0   ;;  %vm1058_vm0 = vmmov 0   ;;  %v1059_v1 = vmov 0.0   ;;  %s1376_s28 = sld [smem:[#allocation17_spill]] }
  0x75   :  { %852 = vmatprep.subr.bf16.mxu0 %v1057_v0  ;;  %798 = vmatprep.mubr.msk.f32.mxu0 %vm1058_vm0, %v1059_v1  ;;  %s1377_s1 = sld [smem:[#allocation16_spill]]  ;;  %vm141_vm1 = vcmask 261120   ;;  %s1378_s20 = sld [smem:[#allocation18_spill]]  ;;  %v250_v19 = vld [vmem:[%s1359_s6] sm:$0xff]  ;;  %v251_v20 = vld [vmem:[%s1359_s6 + $0x8] sm:$0xff]  ;;  %vm254_vm2 = vcmask 130048  }
  0x76   :  { %858 = vmatprep.subr.bf16.mxu1 %v1057_v0  ;;  %805 = vmatprep.mubr.msk.f32.mxu1 %vm1058_vm0, %v1059_v1  ;;  %s1060_s13 = smov 96   ;;  %v859_v21 = vpack.c.bf16 %v251_v20, %v250_v19  ;;  %v246_v23 = vld [vmem:[%s1358_s5] sm:$0xff]  ;;  %v247_v24 = vld [vmem:[%s1358_s5 + $0x8] sm:$0xff]  ;;  %v248_v26 = vld [vmem:[%s1358_s5 + $0x10] sm:$0xff]  ;;  %vm732_vm3 = vcmask 64512   ;;  %vm735_vm4 = vcmask 195584  }
  0x77   :  { %v862_v25 = vpack.c.bf16 %v247_v24, %v246_v23  ;;  %v249_v27 = vld [vmem:[%s1358_s5 + $0x18] sm:$0xff]  ;;  %v747_v32 = vld [vmem:[%s1356_s3] ss:$0 sm:$0xff]  ;;  %v439_v53 = vld [vmem:[%s1363_s10 + $0x8] sm:$0xff] }
  0x78   :  { %860 = vmatpush3.bf16.msra.mxu1 %v859_v21  ;;  %v865_v28 = vpack.c.bf16 %v249_v27, %v248_v26  ;;  %v748_v35 = vld [vmem:[%s1357_s4] ss:$0 sm:$0xff]  ;;  %v751_v42 = vld [vmem:[#allocation2] ss:$0 sm:$0xff]  ;;  %v440_v55 = vld [vmem:[%s1363_s10 + $0x10] sm:$0xff] }
  0x79   :  { %861 = vmatprep.subr.bf16.mxu1 %v1057_v0  ;;  %v438_v52 = vld [vmem:[%s1363_s10] sm:$0xff]  ;;  %v441_v56 = vld [vmem:[%s1363_s10 + $0x18] sm:$0xff]  ;;  %v637_v19 = vld [vmem:[%s1369_s16 + $0x8] sm:$0xff] }
  0x7a   :  { %v130_v2 = vld [vmem:[%s1376_s28] sm:$0xff]  ;;  %v131_v3 = vld [vmem:[%s1376_s28 + $0x8] sm:$0xff]  ;;  %v132_v4 = vld [vmem:[%s1376_s28 + $0x10] sm:$0xff]  ;;  %v868_v54 = vpack.c.bf16 %v439_v53, %v438_v52  ;;  %v871_v57 = vpack.c.bf16 %v441_v56, %v440_v55 }
  0x7b   :  { %v853_v5 = vpack.c.bf16 %v131_v3, %v130_v2  ;;  %v133_v6 = vld [vmem:[%s1376_s28 + $0x18] sm:$0xff]  ;;  %v129_v8 = vld [vmem:[%s1377_s1] sm:$0xff]  ;;  %v554_v21 = vld [vmem:[%s1367_s14 + $0x10] sm:$0xff] }
  0x7c   :  { %v856_v7 = vpack.c.bf16 %v133_v6, %v132_v4  ;;  %v745_v9 = vld [vmem:[%s1378_s20] ss:$0 sm:$0xff]  ;;  %252 = vrot.lane.b32.xlu1 %v129_v8, %s1060_s13  ;;  %v753_v2 = vld [vmem:[#allocation4] ss:$0 sm:$0xff]  ;;  %v754_v6 = vld [vmem:[#allocation6] ss:$0 sm:$0xff] }
  0x7d   :  { %854 = vmatpush3.bf16.msra.mxu0 %v853_v5  ;;  %v752_v61 = vld [vmem:[%s1361_s8] ss:$0 sm:$0xff]  ;;  %v638_v23 = vld [vmem:[%s1369_s16 + $0x10] sm:$0xff] }
  0x7e   :  { %855 = vmatprep.subr.bf16.mxu0 %v1057_v0 }
  0x81   :  { %857 = vmatpush3.bf16.msra.mxu0 %v856_v7 }
  0x82   :  { %867 = vmatprep.subr.bf16.mxu0 %v1057_v0 }
  0x84   :  { %799 = vmatmul.mubr.msk.f32.vlgmr.msra.gmra.mrb[0].mxu0 %vm141_vm1, %v129_v8 }
  0x85   :  { %827 = vmatprep.mubr.msk.f32.mxu0 %vm1058_vm0, %v1059_v1  ;;  %869 = vmatpush3.bf16.msra.mxu0 %v868_v54 }
  0x86   :  { %870 = vmatprep.subr.bf16.mxu0 %v1057_v0 }
  0x89   :  { %872 = vmatpush3.bf16.msra.mxu0 %v871_v57 }
  0x8a   :  { %879 = vmatprep.subr.bf16.mxu0 %v1057_v0 }
  0xee   :  { %v253_v22 = vpop.permute.xlu1 %252 }
  0xef   :  { %806 = vmatmul.mubr.msk.f32.vlgmr.msra.gmra.mrb[0].mxu1 %vm254_vm2, %v253_v22  ;;  %v555_v22 = vld [vmem:[%s1367_s14 + $0x18] sm:$0xff] }
  0xf0   :  { %863 = vmatpush3.bf16.msra.mxu1 %v862_v25  ;;  %816 = vmatprep.mubr.msk.f32.mxu1 %vm1058_vm0, %v1059_v1  ;;  %v877_v24 = vpack.c.bf16 %v555_v22, %v554_v21  ;;  %v639_v25 = vld [vmem:[%s1369_s16 + $0x18] sm:$0xff] }
  0xf1   :  { %864 = vmatprep.subr.bf16.mxu1 %v1057_v0  ;;  %v883_v26 = vpack.c.bf16 %v639_v25, %v638_v23 }
  0xf4   :  { %866 = vmatpush3.bf16.msra.mxu1 %v865_v28 }
  0xf5   :  { %873 = vmatprep.subr.bf16.mxu1 %v1057_v0 }
 0x157   :  { %v211_v10 = vpop.f32.mrb[0].mxu0 }
 0x158   :  { %v212_v11 = vadd.f32 %v745_v9, %v211_v10  ;;  %v800_v12 = vpop.f32.mrb[1].mxu0 }
 0x15a   :  { %v217_v13 = vsel %vm141_vm1, %v212_v11, 0.0 }
 0x15b   :  { %218 = vadd.xlane.f32.xlu0 %v217_v13 }
 0x1c2   :  { %v323_v39 = vpop.f32.mrb[0].mxu1 }
 0x1c3   :  { %v807_v40 = vpop.f32.mrb[1].mxu1 }
 0x1e8   :  { %v219_v14 = vpop.xlane.xlu0 %218 }
 0x1e9   :  { %v221_v15 = vmul.f32 0.03125, %v219_v14 }
 0x1eb   :  { %v222_v16 = vsub.f32 %v212_v11, %v221_v15 }
 0x1ed   :  { %v223_v17 = vmul.f32 %v222_v16, %v222_v16 }
 0x1ef   :  { %v224_v18 = vsel %vm141_vm1, %v223_v17, 0.0  ;;  %v636_v17 = vld [vmem:[%s1369_s16] sm:$0xff]  ;;  %s1062_s16 = smov 8  }
 0x1f0   :  { %225 = vadd.xlane.f32.xlu0 %v224_v18  ;;  %v880_v20 = vpack.c.bf16 %v637_v19, %v636_v17 }
 0x27d   :  { %v226_v29 = vpop.xlane.xlu0 %225 }
 0x27e   :  { %v227_v30 = vmul.f32 0.03125, %v226_v29 }
 0x280   :  { %v228_v31 = vadd.f32 1e-05, %v227_v30  ;;  %v756_v30 = vld [vmem:[%s1365_s12] ss:$0 sm:$0xff]  ;;  %s1061_s12 = smov 16  }
 0x282   :  { %897 = vrsqrt.f32 %v228_v31 }
 0x28c   :  { %v898_v33 = vpop.eup %897 }
 0x28d   :  { %v236_v34 = vmul.f32 %v898_v33, %v747_v32  ;;  %v757_v33 = vld [vmem:[#allocation7] ss:$0 sm:$0xff] }
 0x28f   :  { %v237_v36 = vmul.f32 %v236_v34, %v222_v16  ;;  %v552_v16 = vld [vmem:[%s1367_s14] sm:$0xff] }
 0x291   :  { %v244_v37 = vadd.f32 %v748_v35, %v237_v36 }
 0x293   :  { %899 = vtanh.f32 %v244_v37  ;;  %v760_v37 = vld [vmem:[#allocation10] ss:$0 sm:$0xff] }
 0x29d   :  { %v900_v38 = vpop.eup %899 }
 0x29e   :  { %817 = vmatmul.mubr.msk.f32.vlgmr.msra.gmra.mrb[2].mxu1 %vm141_vm1, %v900_v38 }
 0x29f   :  { %838 = vmatprep.mubr.msk.f32.mxu1 %vm1058_vm0, %v1059_v1 }
 0x371   :  { %v396_v41 = vpop.f32.mrb[2].mxu1 }
 0x372   :  { %v397_v43 = vadd.f32 %v396_v41, %v323_v39  ;;  %v818_v44 = vpop.f32.mrb[3].mxu1 }
 0x374   :  { %v407_v45 = vadd.f32 %v751_v42, %v397_v43 }
 0x376   :  { %v410_v46 = vsel %vm141_vm1, %v407_v45, 0.0 }
 0x377   :  { %411 = vadd.xlane.f32.xlu1 %v410_v46 }
 0x404   :  { %v412_v47 = vpop.xlane.xlu1 %411 }
 0x405   :  { %v413_v48 = vmul.f32 0.03125, %v412_v47 }
 0x407   :  { %v414_v49 = vsub.f32 %v407_v45, %v413_v48 }
 0x409   :  { %v415_v50 = vmul.f32 %v414_v49, %v414_v49 }
 0x40b   :  { %v416_v51 = vsel %vm141_vm1, %v415_v50, 0.0 }
 0x40c   :  { %417 = vadd.xlane.f32.xlu0 %v416_v51 }
 0x499   :  { %v418_v58 = vpop.xlane.xlu0 %417 }
 0x49a   :  { %v419_v59 = vmul.f32 0.03125, %v418_v58 }
 0x49c   :  { %v420_v60 = vadd.f32 1e-05, %v419_v59 }
 0x49e   :  { %901 = vrsqrt.f32 %v420_v60 }
 0x4a8   :  { %v902_v62 = vpop.eup %901 }
 0x4a9   :  { %v428_v63 = vmul.f32 %v902_v62, %v752_v61 }
 0x4ab   :  { %v429_v3 = vmul.f32 %v428_v63, %v414_v49 }
 0x4ad   :  { %v436_v4 = vadd.f32 %v753_v2, %v429_v3 }
 0x4af   :  { %v437_v5 = vmax.f32 %v436_v4, 0.0 }
 0x4b1   :  { %828 = vmatmul.mubr.msk.f32.vlgmr.msra.gmra.mrb[2].mxu0 %vm141_vm1, %v437_v5 }
 0x4b2   :  { %849 = vmatprep.mubr.msk.f32.mxu0 %vm1058_vm0, %v1059_v1  ;;  %v553_v1 = vld [vmem:[%s1367_s14 + $0x8] sm:$0xff]  ;;  %881 = vmatpush3.bf16.msra.mxu0 %v880_v20 }
 0x4b3   :  { %v874_v18 = vpack.c.bf16 %v553_v1, %v552_v16  ;;  %882 = vmatprep.subr.bf16.mxu0 %v1057_v0 }
 0x4b5   :  { %875 = vmatpush3.bf16.msra.mxu1 %v874_v18 }
 0x4b6   :  { %876 = vmatprep.subr.bf16.mxu1 %v1057_v0  ;;  %884 = vmatpush3.bf16.msra.mxu0 %v883_v26  ;;  %v758_v0 = vld [vmem:[#allocation9] ss:$0 sm:$0xff] }
 0x4b9   :  { %878 = vmatpush3.bf16.msra.mxu1 %v877_v24 }
 0x584   :  { %v518_v7 = vpop.f32.mrb[2].mxu0 }
 0x585   :  { %v519_v8 = vadd.f32 %v754_v6, %v518_v7  ;;  %v829_v9 = vpop.f32.mrb[3].mxu0 }
 0x587   :  { %v524_v10 = vsel %vm141_vm1, %v519_v8, 0.0 }
 0x588   :  { %525 = vadd.xlane.f32.xlu0 %v524_v10 }
 0x615   :  { %v526_v11 = vpop.xlane.xlu0 %525 }
 0x616   :  { %v527_v12 = vmul.f32 0.03125, %v526_v11 }
 0x618   :  { %v528_v13 = vsub.f32 %v519_v8, %v527_v12 }
 0x61a   :  { %v529_v14 = vmul.f32 %v528_v13, %v528_v13 }
 0x61c   :  { %v530_v15 = vsel %vm141_vm1, %v529_v14, 0.0 }
 0x61d   :  { %531 = vadd.xlane.f32.xlu0 %v530_v15 }
 0x6aa   :  { %v532_v27 = vpop.xlane.xlu0 %531 }
 0x6ab   :  { %v533_v28 = vmul.f32 0.03125, %v532_v27 }
 0x6ad   :  { %v534_v29 = vadd.f32 1e-05, %v533_v28 }
 0x6af   :  { %903 = vrsqrt.f32 %v534_v29 }
 0x6b9   :  { %v904_v31 = vpop.eup %903 }
 0x6ba   :  { %v542_v32 = vmul.f32 %v904_v31, %v756_v30 }
 0x6bc   :  { %v543_v34 = vmul.f32 %v542_v32, %v528_v13 }
 0x6be   :  { %v550_v35 = vadd.f32 %v757_v33, %v543_v34 }
 0x6c0   :  { %v551_v36 = vmax.f32 %v550_v35, 0.0 }
 0x6c2   :  { %839 = vmatmul.mubr.msk.f32.vlgmr.msra.gmra.mrb[4].mxu1 %vm141_vm1, %v551_v36  ;;  %850 = vmatmul.mubr.msk.f32.vlgmr.msra.gmra.mrb[4].mxu0 %vm141_vm1, %v551_v36 }
 0x795   :  { %v632_v38 = vpop.f32.mrb[4].mxu1  ;;  %v713_v39 = vpop.f32.mrb[4].mxu0 }
 0x796   :  { %v633_v40 = vadd.f32 %v758_v0, %v632_v38  ;;  %v714_v41 = vadd.f32 %v760_v37, %v713_v39  ;;  %v840_v42 = vpop.f32.mrb[5].mxu1  ;;  %v851_v43 = vpop.f32.mrb[5].mxu0 }
 0x798   :  { %905 = vtanh.f32 %v633_v40 }
 0x799   :  { %907 = vtanh.f32 %v714_v41 }
 0x7a2   :  { %v906_v44 = vpop.eup %905 }
 0x7a3   :  { %v908_v45 = vpop.eup %907  ;;  %729 = vrot.lane.b32.xlu1 %v906_v44, %s1061_s12 }
 0x7a4   :  { %v718_v46 = vadd.f32 1.0, %v908_v45 }
 0x7a6   :  { %v719_v47 = vmul.f32 3.5, %v718_v46 }
 0x7a8   :  { %v720_v48 = vadd.f32 -5.0, %v719_v47 }
 0x7aa   :  { %v721_v49 = vmul.f32 1.442695, %v720_v48 }
 0x7ac   :  { %909 = vpow2.f32 %v721_v49 }
 0x7b6   :  { %v910_v50 = vpop.eup %909 }
 0x7b7   :  { %725 = vrot.lane.b32.xlu0 %v910_v50, %s1062_s16 }
 0x815   :  { %v730_v52 = vpop.permute.xlu1 %729 }
 0x829   :  { %v726_v51 = vpop.permute.xlu0 %725 }
 0x82a   :  { %v733_v53 = vsel %vm732_vm3, %v633_v40, %v726_v51 }
 0x82b   :  { %v734_v54 = vsel %vm254_vm2, %v733_v53, %v730_v52 }
 0x82c   :  { %736 = vst.msk [vmem:[%s1371_s18] sm:$0xff] %vm735_vm4, %v734_v54 }
 0x82d   :  { %741 = vsyncpa [#allocation3], 1 }
 0x82e   :  { %742 = vsyncpa [#allocation5], 1 }
 0x82f   :  { %743 = vsyncpa [#allocation8], 1 }
 0x830   :  { %744 = vsyncpa [#allocation11], 1 }

</bundles_post_ra>
